<compile_context>
chip_gen: v6e
topology: v6e:2x2x1
jax: 0.10.0
libtpu: 0.0.40
codegen_flags: <defaults>
</compile_context>

<pallas_src>
import functools

import jax
import jax.numpy as jnp
from jax.experimental import pallas as pl
from jax.experimental.pallas import tpu as pltpu

F = 143          # feature size from the module (Linear(143, 143))
BN_EPS = 1e-3
MAX_TILE_B = 512  # ~85% of HBM roofline at 512; larger buys ~1% and hurts megacore balance


# ----------------------------- Pallas kernel ------------------------------- #
def _dense_classifier_kernel(x_ref, w_ref, v_ref, o_ref):
    """Fused 3x LinLayer forward on one batch tile.

    x_ref : (TB, F)    input tile (f32 or bf16; promoted to f32)
    w_ref : (3, F, F)  per-layer Linear weights, pre-transposed to (in, out), bf16
    v_ref : (3, 8, F)  per-layer packed vectors, rows: [bias, s2, s1*s2, t1*s2+t2, 0...]
    o_ref : (TB, F)    output tile (dtype = input dtype)
    """
    x = x_ref[...].astype(jnp.float32)
    for l in range(3):
        vl = v_ref[l]                                  # (8, F) f32, own sublane tile
        bias, s2, s12, t12 = vl[0:1], vl[1:2], vl[2:3], vl[3:4]
        # Linear (bf16 operands on the MXU, f32 accumulation), then bias + ReLU
        y = jnp.dot(x.astype(jnp.bfloat16), w_ref[l],
                    preferred_element_type=jnp.float32)
        y = jnp.maximum(y + bias, 0.0)
        # Folded epilogue: bn2(x + dropout(bn1(y))) == x*s2 + y*(s1*s2) + (t1*s2 + t2)
        # (dropout = identity in eval mode; BN folded from running stats, eps=1e-3)
        x = x * s2 + y * s12 + t12
    o_ref[...] = x.astype(o_ref.dtype)


# ------------------------------ JAX wrapper -------------------------------- #
def _fold_bn(gamma, beta, rm, rv, eps=BN_EPS):
    scale = gamma / jnp.sqrt(rv + eps)
    shift = beta - rm * scale
    return scale, shift


def prepare_params(params):
    """One-time weight packing (outside the jitted forward).

    Returns:
      w_stack: (3, F, F) bf16, each layer's weight transposed to (in, out)
      v_stack: (3, 8, F) f32, rows per layer: [bias, s2, s1*s2, t1*s2+t2, 0, 0, 0, 0]
    """
    w_stack = jnp.stack([p["lin_w"].T for p in params], axis=0).astype(jnp.bfloat16)
    layers = []
    zero = jnp.zeros((F,), jnp.float32)
    for p in params:
        s1, t1 = _fold_bn(p["bn1_gamma"], p["bn1_beta"], p["bn1_rm"], p["bn1_rv"])
        s2, t2 = _fold_bn(p["bn2_gamma"], p["bn2_beta"], p["bn2_rm"], p["bn2_rv"])
        layers.append(jnp.stack(
            [p["lin_b"], s2, s1 * s2, t1 * s2 + t2, zero, zero, zero, zero], axis=0))
    v_stack = jnp.stack(layers, axis=0).astype(jnp.float32)
    return w_stack, v_stack


def _round_up(n, m):
    return ((n + m - 1) // m) * m


def _tensorcores_per_device():
    """Best-effort TensorCore count behind one JAX device (megacore / v7x -> 2)."""
    try:
        kind = jax.devices()[0].device_kind.lower()
    except Exception:
        return 1
    if "lite" in kind or "v5e" in kind or "v6e" in kind or "v6 lite" in kind:
        return 1
    return 2 if any(tag in kind for tag in ("v4", "v5p", "v7")) else 1


def _pick_tile(B, cores):
    b8 = max(8, _round_up(B, 8))
    if cores >= 2:
        # >=2 grid steps per TensorCore so double-buffering has DMA to hide.
        t = max(8, _round_up(pl.cdiv(B, 2 * cores), 8))
    else:
        # single TensorCore: one big step for small B; 512-row tiles for large B.
        t = b8
    return min(MAX_TILE_B, t, b8)


@functools.partial(jax.jit, static_argnames=("tile_b",))
def _forward_impl(x, w_stack, v_stack, tile_b):
    B = x.shape[0]
    grid = (pl.cdiv(B, tile_b),)   # ragged tail handled in-kernel by Pallas masking
    x_spec = pl.BlockSpec((tile_b, F), lambda i: (i, 0))
    return pl.pallas_call(
        _dense_classifier_kernel,
        out_shape=jax.ShapeDtypeStruct((B, F), x.dtype),
        grid=grid,
        in_specs=[
            x_spec,
            pl.BlockSpec((3, F, F), lambda i: (0, 0, 0)),   # weights stay resident
            pl.BlockSpec((3, 8, F), lambda i: (0, 0, 0)),   # folded BN vectors resident
        ],
        out_specs=x_spec,
        compiler_params=pltpu.CompilerParams(
            dimension_semantics=("parallel",)),
    )(x, w_stack, v_stack)


def dense_classifier_forward(x, packed, tile_b=None):
    """x: (B, 143) float array. Output dtype == input dtype (pass bf16 x for bf16 I/O)."""
    w_stack, v_stack = packed
    if tile_b is None:
        tile_b = _pick_tile(x.shape[0], _tensorcores_per_device())
    return _forward_impl(x, w_stack, v_stack, tile_b=tile_b)


# ------------------------- deterministic parameters ------------------------ #
def init_params(key):
    params = []
    for _ in range(3):
        keys = jax.random.split(key, 11)
        key = keys[0]
        bound = 1.0 / jnp.sqrt(F)  # PyTorch Linear default init range
        p = {
            "lin_w": jax.random.uniform(keys[1], (F, F), jnp.float32, -bound, bound),
            "lin_b": jax.random.uniform(keys[2], (F,), jnp.float32, -bound, bound),
            "bn1_gamma": 1.0 + 0.1 * jax.random.normal(keys[3], (F,), jnp.float32),
            "bn1_beta": 0.1 * jax.random.normal(keys[4], (F,), jnp.float32),
            "bn1_rm": 0.1 * jax.random.normal(keys[5], (F,), jnp.float32),
            "bn1_rv": 1.0 + 0.1 * jax.random.uniform(keys[6], (F,), jnp.float32),
            "bn2_gamma": 1.0 + 0.1 * jax.random.normal(keys[7], (F,), jnp.float32),
            "bn2_beta": 0.1 * jax.random.normal(keys[8], (F,), jnp.float32),
            "bn2_rm": 0.1 * jax.random.normal(keys[9], (F,), jnp.float32),
            "bn2_rv": 1.0 + 0.1 * jax.random.uniform(keys[10], (F,), jnp.float32),
        }
        params.append(p)
    return params


# ------------------------------ pure-JAX ref -------------------------------- #
def reference_forward(x, params):
    """Module semantics in eval mode, with the kernel's bf16 matmul / f32 accumulation."""
    for p in params:
        s1, t1 = _fold_bn(p["bn1_gamma"], p["bn1_beta"], p["bn1_rm"], p["bn1_rv"])
        s2, t2 = _fold_bn(p["bn2_gamma"], p["bn2_beta"], p["bn2_rm"], p["bn2_rv"])
        y = jnp.dot(x.astype(jnp.bfloat16),
                    p["lin_w"].T.astype(jnp.bfloat16),
                    preferred_element_type=jnp.float32)
        y = jnp.maximum(y + p["lin_b"], 0.0)
        y = y * s1 + t1                 # bn1 (eval), dropout = identity
        x = (x + y) * s2 + t2           # skip + bn2 (eval)
    return x


if __name__ == "__main__":
    key = jax.random.PRNGKey(0)
    k_x, k_p = jax.random.split(key)
    params = init_params(k_p)
    packed = prepare_params(params)

    # primary run: small shape consistent with the module (batch 16, 143 features)
    B = 16
    x = jax.random.normal(k_x, (B, F), jnp.float32)
    out = jax.block_until_ready(dense_classifier_forward(x, packed))
    ref = reference_forward(x, params)
    assert out.shape == (B, F) and out.dtype == jnp.float32
    assert jnp.allclose(out, ref, atol=2e-3, rtol=2e-3), (
        float(jnp.max(jnp.abs(out - ref))))

    # ragged batch exercises the in-kernel masked tail block (no host-side pad)
    B2 = 13
    x2 = jax.random.normal(jax.random.PRNGKey(1), (B2, F), jnp.float32)
    out2 = jax.block_until_ready(dense_classifier_forward(x2, packed))
    ref2 = reference_forward(x2, params)
    assert out2.shape == (B2, F)
    assert jnp.allclose(out2, ref2, atol=2e-3, rtol=2e-3), (
        float(jnp.max(jnp.abs(out2 - ref2))))

    # bf16-I/O path (halves HBM traffic at large B); internal math stays f32,
    # reference mimics the input/output rounding.
    x3 = x.astype(jnp.bfloat16)
    out3 = jax.block_until_ready(dense_classifier_forward(x3, packed))
    ref3 = reference_forward(x3.astype(jnp.float32), params).astype(jnp.bfloat16)
    assert out3.shape == (B, F) and out3.dtype == jnp.bfloat16
    assert jnp.allclose(out3.astype(jnp.float32), ref3.astype(jnp.float32),
                        atol=2e-2, rtol=2e-2), (
        float(jnp.max(jnp.abs(out3.astype(jnp.float32) - ref3.astype(jnp.float32)))))

    print("KERNEL_OK")
</pallas_src>

<mosaic_0001>
module attributes {stable_mosaic.version = 11 : i64} {
  func.func @_dense_classifier_kernel(%arg0: i32, %arg1: memref<16x143xf32, #tpu.memory_space<vmem>>, %arg2: memref<3x143x143xbf16, #tpu.memory_space<vmem>>, %arg3: memref<3x8x143xf32, #tpu.memory_space<vmem>>, %arg4: memref<16x143xf32, #tpu.memory_space<vmem>>) attributes {dimension_semantics = [#tpu.dimension_semantics<parallel>], iteration_bounds = array<i64: 1>, scalar_prefetch = 0 : i64, scratch_operands = 0 : i64, tpu.core_type = #tpu.core_type<tc>, window_params = [{transform_indices = @transform_0, window_bounds = array<i64: 16, 143>}, {pipeline_mode = #tpu.pipeline_mode<synchronous>, transform_indices = @transform_1, window_bounds = array<i64: 3, 143, 143>}, {pipeline_mode = #tpu.pipeline_mode<synchronous>, transform_indices = @transform_2, window_bounds = array<i64: 3, 8, 143>}, {transform_indices = @transform_3, window_bounds = array<i64: 16, 143>}]} {
    %c0 = arith.constant 0 : index
    %c0_0 = arith.constant 0 : index
    %0 = vector.load %arg1[%c0, %c0_0] : memref<16x143xf32, #tpu.memory_space<vmem>>, vector<16x143xf32>
    %c0_1 = arith.constant 0 : index
    %c0_2 = arith.constant 0 : index
    %c0_3 = arith.constant 0 : index
    %1 = vector.load %arg3[%c0_1, %c0_2, %c0_3] : memref<3x8x143xf32, #tpu.memory_space<vmem>>, vector<1x8x143xf32>
    %2 = vector.shape_cast %1 : vector<1x8x143xf32> to vector<8x143xf32>
    %3 = vector.extract_strided_slice %2 {offsets = [0, 0], sizes = [1, 143], strides = [1, 1]} : vector<8x143xf32> to vector<1x143xf32>
    %4 = vector.extract_strided_slice %2 {offsets = [1, 0], sizes = [1, 143], strides = [1, 1]} : vector<8x143xf32> to vector<1x143xf32>
    %5 = vector.extract_strided_slice %2 {offsets = [2, 0], sizes = [1, 143], strides = [1, 1]} : vector<8x143xf32> to vector<1x143xf32>
    %6 = vector.extract_strided_slice %2 {offsets = [3, 0], sizes = [1, 143], strides = [1, 1]} : vector<8x143xf32> to vector<1x143xf32>
    %7 = arith.truncf %0 : vector<16x143xf32> to vector<16x143xbf16>
    %c0_4 = arith.constant 0 : index
    %c0_5 = arith.constant 0 : index
    %c0_6 = arith.constant 0 : index
    %8 = vector.load %arg2[%c0_4, %c0_5, %c0_6] : memref<3x143x143xbf16, #tpu.memory_space<vmem>>, vector<1x143x143xbf16>
    %9 = vector.shape_cast %8 : vector<1x143x143xbf16> to vector<143x143xbf16>
    %cst = arith.constant dense<0.000000e+00> : vector<16x143xf32>
    %10 = tpu.matmul %7, %9, %cst {dimension_numbers = #tpu.dot_dimension_numbers<[1], [0], [0], [1], [0, 0, 1, 1], [], []>} : vector<16x143xbf16>, vector<143x143xbf16>, vector<16x143xf32> -> vector<16x143xf32>
    %11 = vector.broadcast %3 : vector<1x143xf32> to vector<16x143xf32>
    %12 = arith.addf %10, %11 : vector<16x143xf32>
    %cst_7 = arith.constant 0.000000e+00 : f32
    %13 = vector.broadcast %cst_7 : f32 to vector<16x143xf32>
    %14 = arith.maximumf %12, %13 : vector<16x143xf32>
    %15 = vector.broadcast %4 : vector<1x143xf32> to vector<16x143xf32>
    %16 = arith.mulf %0, %15 : vector<16x143xf32>
    %17 = vector.broadcast %5 : vector<1x143xf32> to vector<16x143xf32>
    %18 = arith.mulf %14, %17 : vector<16x143xf32>
    %19 = arith.addf %16, %18 : vector<16x143xf32>
    %20 = vector.broadcast %6 : vector<1x143xf32> to vector<16x143xf32>
    %21 = arith.addf %19, %20 : vector<16x143xf32>
    %c1 = arith.constant 1 : index
    %c0_8 = arith.constant 0 : index
    %c0_9 = arith.constant 0 : index
    %22 = vector.load %arg3[%c1, %c0_8, %c0_9] : memref<3x8x143xf32, #tpu.memory_space<vmem>>, vector<1x8x143xf32>
    %23 = vector.shape_cast %22 : vector<1x8x143xf32> to vector<8x143xf32>
    %24 = vector.extract_strided_slice %23 {offsets = [0, 0], sizes = [1, 143], strides = [1, 1]} : vector<8x143xf32> to vector<1x143xf32>
    %25 = vector.extract_strided_slice %23 {offsets = [1, 0], sizes = [1, 143], strides = [1, 1]} : vector<8x143xf32> to vector<1x143xf32>
    %26 = vector.extract_strided_slice %23 {offsets = [2, 0], sizes = [1, 143], strides = [1, 1]} : vector<8x143xf32> to vector<1x143xf32>
    %27 = vector.extract_strided_slice %23 {offsets = [3, 0], sizes = [1, 143], strides = [1, 1]} : vector<8x143xf32> to vector<1x143xf32>
    %28 = arith.truncf %21 : vector<16x143xf32> to vector<16x143xbf16>
    %c1_10 = arith.constant 1 : index
    %c0_11 = arith.constant 0 : index
    %c0_12 = arith.constant 0 : index
    %29 = vector.load %arg2[%c1_10, %c0_11, %c0_12] : memref<3x143x143xbf16, #tpu.memory_space<vmem>>, vector<1x143x143xbf16>
    %30 = vector.shape_cast %29 : vector<1x143x143xbf16> to vector<143x143xbf16>
    %cst_13 = arith.constant dense<0.000000e+00> : vector<16x143xf32>
    %31 = tpu.matmul %28, %30, %cst_13 {dimension_numbers = #tpu.dot_dimension_numbers<[1], [0], [0], [1], [0, 0, 1, 1], [], []>} : vector<16x143xbf16>, vector<143x143xbf16>, vector<16x143xf32> -> vector<16x143xf32>
    %32 = vector.broadcast %24 : vector<1x143xf32> to vector<16x143xf32>
    %33 = arith.addf %31, %32 : vector<16x143xf32>
    %cst_14 = arith.constant 0.000000e+00 : f32
    %34 = vector.broadcast %cst_14 : f32 to vector<16x143xf32>
    %35 = arith.maximumf %33, %34 : vector<16x143xf32>
    %36 = vector.broadcast %25 : vector<1x143xf32> to vector<16x143xf32>
    %37 = arith.mulf %21, %36 : vector<16x143xf32>
    %38 = vector.broadcast %26 : vector<1x143xf32> to vector<16x143xf32>
    %39 = arith.mulf %35, %38 : vector<16x143xf32>
    %40 = arith.addf %37, %39 : vector<16x143xf32>
    %41 = vector.broadcast %27 : vector<1x143xf32> to vector<16x143xf32>
    %42 = arith.addf %40, %41 : vector<16x143xf32>
    %c2 = arith.constant 2 : index
    %c0_15 = arith.constant 0 : index
    %c0_16 = arith.constant 0 : index
    %43 = vector.load %arg3[%c2, %c0_15, %c0_16] : memref<3x8x143xf32, #tpu.memory_space<vmem>>, vector<1x8x143xf32>
    %44 = vector.shape_cast %43 : vector<1x8x143xf32> to vector<8x143xf32>
    %45 = vector.extract_strided_slice %44 {offsets = [0, 0], sizes = [1, 143], strides = [1, 1]} : vector<8x143xf32> to vector<1x143xf32>
    %46 = vector.extract_strided_slice %44 {offsets = [1, 0], sizes = [1, 143], strides = [1, 1]} : vector<8x143xf32> to vector<1x143xf32>
    %47 = vector.extract_strided_slice %44 {offsets = [2, 0], sizes = [1, 143], strides = [1, 1]} : vector<8x143xf32> to vector<1x143xf32>
    %48 = vector.extract_strided_slice %44 {offsets = [3, 0], sizes = [1, 143], strides = [1, 1]} : vector<8x143xf32> to vector<1x143xf32>
    %49 = arith.truncf %42 : vector<16x143xf32> to vector<16x143xbf16>
    %c2_17 = arith.constant 2 : index
    %c0_18 = arith.constant 0 : index
    %c0_19 = arith.constant 0 : index
    %50 = vector.load %arg2[%c2_17, %c0_18, %c0_19] : memref<3x143x143xbf16, #tpu.memory_space<vmem>>, vector<1x143x143xbf16>
    %51 = vector.shape_cast %50 : vector<1x143x143xbf16> to vector<143x143xbf16>
    %cst_20 = arith.constant dense<0.000000e+00> : vector<16x143xf32>
    %52 = tpu.matmul %49, %51, %cst_20 {dimension_numbers = #tpu.dot_dimension_numbers<[1], [0], [0], [1], [0, 0, 1, 1], [], []>} : vector<16x143xbf16>, vector<143x143xbf16>, vector<16x143xf32> -> vector<16x143xf32>
    %53 = vector.broadcast %45 : vector<1x143xf32> to vector<16x143xf32>
    %54 = arith.addf %52, %53 : vector<16x143xf32>
    %cst_21 = arith.constant 0.000000e+00 : f32
    %55 = vector.broadcast %cst_21 : f32 to vector<16x143xf32>
    %56 = arith.maximumf %54, %55 : vector<16x143xf32>
    %57 = vector.broadcast %46 : vector<1x143xf32> to vector<16x143xf32>
    %58 = arith.mulf %42, %57 : vector<16x143xf32>
    %59 = vector.broadcast %47 : vector<1x143xf32> to vector<16x143xf32>
    %60 = arith.mulf %56, %59 : vector<16x143xf32>
    %61 = arith.addf %58, %60 : vector<16x143xf32>
    %62 = vector.broadcast %48 : vector<1x143xf32> to vector<16x143xf32>
    %63 = arith.addf %61, %62 : vector<16x143xf32>
    %c0_22 = arith.constant 0 : index
    %c0_23 = arith.constant 0 : index
    %64 = vector.load %arg4[%c0_22, %c0_23] : memref<16x143xf32, #tpu.memory_space<vmem>>, vector<16x143xf32>
    tpu.vector_store %arg4[%c0_22, %c0_23], %63 {strides = array<i32>} : memref<16x143xf32, #tpu.memory_space<vmem>>, vector<16x143xf32>,
    return
  }
  func.func @transform_0(%arg0: i32) -> (i32, i32) {
    %c0_i32 = arith.constant 0 : i32
    %c0_i32_0 = arith.constant 0 : i32
    return %arg0, %c0_i32 : i32, i32
  }
  func.func @transform_1(%arg0: i32) -> (i32, i32, i32) {
    %c0_i32 = arith.constant 0 : i32
    %c0_i32_0 = arith.constant 0 : i32
    %c0_i32_1 = arith.constant 0 : i32
    %c0_i32_2 = arith.constant 0 : i32
    return %c0_i32, %c0_i32_0, %c0_i32_1 : i32, i32, i32
  }
  func.func @transform_2(%arg0: i32) -> (i32, i32, i32) {
    %c0_i32 = arith.constant 0 : i32
    %c0_i32_0 = arith.constant 0 : i32
    %c0_i32_1 = arith.constant 0 : i32
    %c0_i32_2 = arith.constant 0 : i32
    return %c0_i32, %c0_i32_0, %c0_i32_1 : i32, i32, i32
  }
  func.func @transform_3(%arg0: i32) -> (i32, i32) {
    %c0_i32 = arith.constant 0 : i32
    %c0_i32_0 = arith.constant 0 : i32
    return %arg0, %c0_i32 : i32, i32
  }
}

</mosaic_0001>

<bundles_post_ra>
// kernel: _forward_impl.1
= control target key start
LH: loop header
LB: loop body
LE: loop exit
PB: predicated region body
PF: predicated region fallthrough
CT: control target
= control target key end

     0   :  { %8 = vsyncpa [#allocation3], 0  ;;  %s1074_s0 = inlined_call_operand.hbm [shape: f32[16,143], index: 0, kind: input, shape index: {}]   ;;  %s1075_s1 = inlined_call_operand.hbm [shape: bf16[3,143,143], index: 1, kind: input, shape index: {}]   ;;  %s1076_s2 = inlined_call_operand.hbm [shape: f32[3,8,143], index: 2, kind: input, shape index: {}]   ;;  %s1077_s3 = inlined_call_operand.hbm [shape: f32[16,143], index: 3, kind: output, shape index: {}]  }
   0x1   :  { %9 = vsyncpa [#allocation6], 0 }
   0x2   :  { %10 = vsyncpa [#allocation4], 0  ;;  %s967_s12 = smov [#allocation5]  }
   0x3   :  { %s28_s13 = sshll.u32 %s967_s12, 4  ;;  %s29_s13 = int_to_ptr.vmem [resolvable:$true] %s28_s13 }
   0x4   :  { %s889_s14 = scalar_lea.vmem %s29_s13, 6912  ;;  %p894_p1 = scmp.lt.s32.totalorder %s29_s13, %s29_s13 }
   0x5   :  { %p890_p0 = scmp.ne.s32.totalorder %s29_s13, %s889_s14  ;;  %p895_p2 = scmp.lt.s32.totalorder %s889_s14, %s889_s14 }
   0x7   :  { %p896_p3 = por %p895_p2, %p894_p1 }
   0x9   :  { %p897_p4 = pnand %p896_p3, %p890_p0 }
   0xb   :  { %900 = shalt.err (!%p897_p4)
}
   0xc   :  { %s968_s15 = smov 128   ;;  %s969_s16 = smov 8  }
   0xd   :  { %34 = dma.hbm_to_vmem [thread:$0]  %s1075_s1, 6912, %s29_s13, [#allocation6], %s968_s15, %s968_s15, %s969_s16  }
   0xe   :  { %s970_s19 = smov [#allocation2]  }
   0xf   :  { %s16_s20 = sshll.u32 %s970_s19, 4  ;;  %s17_s20 = int_to_ptr.vmem [resolvable:$true] %s16_s20 }
  0x10   :  { %s909_s21 = scalar_lea.vmem %s17_s20, 512  ;;  %p914_p6 = scmp.lt.s32.totalorder %s17_s20, %s17_s20 }
  0x11   :  { %p910_p5 = scmp.ne.s32.totalorder %s17_s20, %s909_s21  ;;  %p915_p7 = scmp.lt.s32.totalorder %s909_s21, %s909_s21 }
  0x13   :  { %p916_p8 = por %p915_p7, %p914_p6 }
  0x15   :  { %p917_p9 = pnand %p916_p8, %p910_p5 }
  0x17   :  { %920 = shalt.err (!%p917_p9)
}
  0x18   :  { %s971_s22 = smov 256   ;;  %s972_s23 = smov 16  }
  0x19   :  { %22 = dma.hbm_to_vmem [thread:$0]  %s1074_s0, 512, %s17_s20, [#allocation3], %s971_s22, %s971_s22, %s972_s23  }
  0x1a   :  { %s973_s1 = smov [#allocation7]  }
  0x1b   :  { %s40_s26 = sshll.u32 %s973_s1, 4  ;;  %s41_s26 = int_to_ptr.vmem [resolvable:$true] %s40_s26 }
  0x1c   :  { %s929_s27 = scalar_lea.vmem %s41_s26, 768  ;;  %p934_p11 = scmp.lt.s32.totalorder %s41_s26, %s41_s26 }
  0x1d   :  { %p930_p10 = scmp.ne.s32.totalorder %s41_s26, %s929_s27  ;;  %p935_p12 = scmp.lt.s32.totalorder %s929_s27, %s929_s27 }
  0x1f   :  { %p936_p13 = por %p935_p12, %p934_p11 }
  0x21   :  { %p937_p0 = pnand %p936_p13, %p930_p10 }
  0x23   :  { %940 = shalt.err (!%p937_p0)
}
  0x24   :  { %46 = dma.hbm_to_vmem [thread:$0]  %s1076_s2, 768, %s41_s26, [#allocation6], %s971_s22, %s971_s22, %s972_s23  }
  0x25   :  { %961 = dma.done.wait [#allocation3], 512  }
  0x26   :  { %962 = vsyncadd [#allocation3], 4294966784 }
  0x27   :  { %963 = dma.done.wait [#allocation6], 7680  }
  0x28   :  { %964 = vsyncadd [#allocation6], 4294959616  ;;  %v800_v0 = vld [vmem:[#allocation5 + $0x74] ss:$8 sps:$4 sm:$0xff]   ;;  %v802_v1 = vld [vmem:[#allocation5 + $0x70] ss:$8 sps:$4 sm:$0xff]   ;;  %v83_v57 = vlaneseq }
  0x29   :  { %193 = vmatprep.subr.bf16.mxu0 %v800_v0  ;;  %v803_v2 = vld [vmem:[#allocation5 + $0x64] ss:$8 sps:$4 sm:$0xff]   ;;  %v805_v3 = vld [vmem:[#allocation5 + $0x60] ss:$8 sps:$4 sm:$0xff]   ;;  %v806_v4 = vld [vmem:[#allocation5 + $0x54] ss:$8 sps:$4 sm:$0xff]  }
  0x2a   :  { %194 = vmatpush1.bf16.msra.mxu0 %v802_v1  ;;  %v808_v5 = vld [vmem:[#allocation5 + $0x50] ss:$8 sps:$4 sm:$0xff]   ;;  %v809_v6 = vld [vmem:[#allocation5 + $0x44] ss:$8 sps:$4 sm:$0xff]   ;;  %v811_v7 = vld [vmem:[#allocation5 + $0x40] ss:$8 sps:$4 sm:$0xff]  }
  0x2b   :  { %195 = vmatprep.subr.bf16.mxu0 %v803_v2  ;;  %v812_v8 = vld [vmem:[#allocation5 + $0x34] ss:$8 sps:$4 sm:$0xff]   ;;  %v1011_v9 = vld [vmem:[#allocation2 + $0x8] sm:$0xff]  ;;  %vm179_vm0 = vcmask 121856   ;;  %v814_v11 = vld [vmem:[#allocation5 + $0x30] ss:$8 sps:$4 sm:$0xff]  }
  0x2c   :  { %v1013_v10 = vld [vmem:[#allocation2 + $0x18] sm:$0xff]  ;;  %v827_v13 = vld [vmem:[#allocation5 + $0x104] ss:$8 sps:$4 sm:$0xff]   ;;  %v829_v14 = vld [vmem:[#allocation5 + $0x100] ss:$8 sps:$4 sm:$0xff]   ;;  %vm183_vm1 = vcmask 1046528  }
  0x2d   :  { %v64_v12 = vpack.c.bf16 %v1013_v10, %v1011_v9  ;;  %v815_v15 = vld [vmem:[#allocation5 + $0x24] ss:$8 sps:$4 sm:$0xff]   ;;  %409 = vmatprep.subr.bf16.mxu1 %v827_v13  ;;  %v830_v16 = vld [vmem:[#allocation5 + $0xf4] ss:$8 sps:$4 sm:$0xff]   ;;  %v817_v17 = vld [vmem:[#allocation5 + $0x20] ss:$8 sps:$4 sm:$0xff]  }
  0x2e   :  { %196 = vmatpush1.bf16.msra.mxu0 %v805_v3  ;;  %410 = vmatpush1.bf16.msra.mxu1 %v829_v14  ;;  %v832_v18 = vld [vmem:[#allocation5 + $0xf0] ss:$8 sps:$4 sm:$0xff]   ;;  %v818_v19 = vld [vmem:[#allocation5 + $0x14] ss:$8 sps:$4 sm:$0xff]   ;;  %v833_v20 = vld [vmem:[#allocation5 + $0xe4] ss:$8 sps:$4 sm:$0xff]  }
  0x2f   :  { %197 = vmatprep.subr.bf16.mxu0 %v806_v4  ;;  %752 = vmatprep.mubr.msk.bf16.mxu0 %vm179_vm0, %v64_v12  ;;  %v835_v21 = vld [vmem:[#allocation5 + $0xe0] ss:$8 sps:$4 sm:$0xff]   ;;  %v836_v22 = vld [vmem:[#allocation5 + $0xd4] ss:$8 sps:$4 sm:$0xff]   ;;  %v820_v23 = vld [vmem:[#allocation5 + $0x10] ss:$8 sps:$4 sm:$0xff]  }
  0x30   :  { %411 = vmatprep.subr.bf16.mxu1 %v830_v16  ;;  %v821_v24 = vld [vmem:[#allocation5 + $0x4] ss:$8 sps:$4 sm:$0xff]   ;;  %vm184_vm2 = vcmask 1047552   ;;  %v974_v26 = vmov 65535   ;;  %v838_v28 = vld [vmem:[#allocation5 + $0xd0] ss:$8 sps:$4 sm:$0xff]  }
  0x31   :  { %v824_v25 = vld [vmem:[#allocation5 + $0x84] ss:$8 sps:$4 sm:$0xff]   ;;  %v185_v27 = vsel %vm183_vm1, 4294967295, %v974_v26  ;;  %v823_v29 = vld [vmem:[#allocation5] ss:$8 sps:$4 sm:$0xff]   ;;  %v1022_v35 = vld [vmem:[#allocation2 + $0x10] sm:$0xff] }
  0x32   :  { %198 = vmatpush1.bf16.msra.mxu0 %v808_v5  ;;  %412 = vmatpush1.bf16.msra.mxu1 %v832_v18  ;;  %v1018_v30 = vsel %vm184_vm2, %v185_v27, 0  ;;  %v826_v31 = vld [vmem:[#allocation5 + $0x80] ss:$8 sps:$4 sm:$0xff]   ;;  %v839_v37 = vld [vmem:[#allocation5 + $0xc4] ss:$8 sps:$4 sm:$0xff]   ;;  %v84_v58 = vshrl.u32 %v83_v57, 7 }
  0x33   :  { %199 = vmatprep.subr.bf16.mxu0 %v809_v6  ;;  %413 = vmatprep.subr.bf16.mxu1 %v833_v20  ;;  %v191_v32 = vand.u32 %v824_v25, %v1018_v30  ;;  %v188_v33 = vand.u32 %v826_v31, %v1018_v30  ;;  %v57_v34 = vld [vmem:[#allocation2] sm:$0xff]  ;;  %v842_v39 = vld [vmem:[#allocation5 + $0xb4] ss:$8 sps:$4 sm:$0xff]   ;;  %v844_v40 = vld [vmem:[#allocation5 + $0xb0] ss:$8 sps:$4 sm:$0xff]   ;;  %s975_s0 = smov [#allocation8]  }
  0x34   :  { %v63_v36 = vpack.c.bf16 %v1022_v35, %v57_v34  ;;  %v841_v38 = vld [vmem:[#allocation5 + $0xc0] ss:$8 sps:$4 sm:$0xff]   ;;  %v845_v41 = vld [vmem:[#allocation5 + $0xa4] ss:$8 sps:$4 sm:$0xff]   ;;  %v848_v43 = vld [vmem:[#allocation5 + $0x94] ss:$8 sps:$4 sm:$0xff]  }
  0x35   :  { %v847_v42 = vld [vmem:[#allocation5 + $0xa0] ss:$8 sps:$4 sm:$0xff]   ;;  %v850_v44 = vld [vmem:[#allocation5 + $0x90] ss:$8 sps:$4 sm:$0xff]   ;;  %v851_v45 = vld [vmem:[#allocation5 + $0x114] ss:$8 sps:$4 sm:$0xff]  }
  0x36   :  { %200 = vmatpush1.bf16.msra.mxu0 %v811_v7  ;;  %414 = vmatpush1.bf16.msra.mxu1 %v835_v21  ;;  %v853_v46 = vld [vmem:[#allocation5 + $0x110] ss:$8 sps:$4 sm:$0xff]   ;;  %v407_v47 = vand.u32 %v851_v45, %v1018_v30  ;;  %v856_v50 = vld [vmem:[#allocation5 + $0x194] ss:$8 sps:$4 sm:$0xff]   ;;  %v859_v51 = vld [vmem:[#allocation5 + $0x184] ss:$8 sps:$4 sm:$0xff]  }
  0x37   :  { %201 = vmatprep.subr.bf16.mxu0 %v812_v8  ;;  %415 = vmatprep.subr.bf16.mxu1 %v836_v22  ;;  %v404_v48 = vand.u32 %v853_v46, %v1018_v30  ;;  %v854_v49 = vld [vmem:[#allocation5 + $0x190] ss:$8 sps:$4 sm:$0xff]   ;;  %v857_v52 = vld [vmem:[#allocation5 + $0x180] ss:$8 sps:$4 sm:$0xff]   ;;  %v862_v53 = vld [vmem:[#allocation5 + $0x174] ss:$8 sps:$4 sm:$0xff]  }
  0x38   :  { %v860_v54 = vld [vmem:[#allocation5 + $0x170] ss:$8 sps:$4 sm:$0xff]   ;;  %v865_v55 = vld [vmem:[#allocation5 + $0x164] ss:$8 sps:$4 sm:$0xff]   ;;  %v863_v56 = vld [vmem:[#allocation5 + $0x160] ss:$8 sps:$4 sm:$0xff]  }
  0x39   :  { %v1027_v59 = vsub.s32 0, %v84_v58  ;;  %v61_v60 = vld [vmem:[#allocation7] sm:$0xff]  ;;  %v62_v61 = vld [vmem:[#allocation7 + $0x8] sm:$0xff]  ;;  %v1029_v62 = vsub.s32 1, %v84_v58  ;;  %v1032_v0 = vsub.s32 2, %v84_v58  ;;  %v1039_v18 = vsub.s32 3, %v84_v58 }
  0x3a   :  { %202 = vmatpush1.bf16.msra.mxu0 %v814_v11  ;;  %416 = vmatpush1.bf16.msra.mxu1 %v838_v28  ;;  %v872_v45 = vld [vmem:[#allocation5 + $0x130] ss:$8 sps:$4 sm:$0xff]   ;;  %v877_v46 = vld [vmem:[#allocation5 + $0x124] ss:$8 sps:$4 sm:$0xff]   ;;  %s721_s2 = sshll.u32 %s975_s0, 4  ;;  %s722_s2 = int_to_ptr.vmem [resolvable:$true] %s721_s2 }
  0x3b   :  { %203 = vmatprep.subr.bf16.mxu0 %v815_v15  ;;  %417 = vmatprep.subr.bf16.mxu1 %v839_v37  ;;  %v86_v63 = vrot.slane %v61_v60, %v1027_v59  ;;  %v90_v1 = vrot.slane %v62_v61, %v1027_v59  ;;  %v243_v2 = vrot.slane %v61_v60, %v1029_v62  ;;  %s941_s30 = scalar_lea.vmem %s722_s2, 512  ;;  %p946_p2 = scmp.lt.s32.totalorder %s722_s2, %s722_s2 }
  0x3c   :  { %v255_v5 = vrot.slane %v61_v60, %v1032_v0  ;;  %v247_v6 = vrot.slane %v62_v61, %v1029_v62  ;;  %v259_v12 = vrot.slane %v62_v61, %v1032_v0  ;;  %p942_p1 = scmp.ne.s32.totalorder %s722_s2, %s941_s30  ;;  %p947_p3 = scmp.lt.s32.totalorder %s941_s30, %s941_s30 }
  0x3d   :  { %v248_v13 = vmul.f32 %v243_v2, %v57_v34  ;;  %v250_v21 = vmul.f32 %v243_v2, %v1022_v35  ;;  %v275_v34 = vrot.slane %v62_v61, %v1039_v18 }
  0x3e   :  { %204 = vmatpush1.bf16.msra.mxu0 %v817_v17  ;;  %418 = vmatpush1.bf16.msra.mxu1 %v841_v38  ;;  %v251_v25 = vmul.f32 %v247_v6, %v1013_v10  ;;  %v868_v10 = vld [vmem:[#allocation5 + $0x154] ss:$8 sps:$4 sm:$0xff]   ;;  %p948_p4 = por %p947_p3, %p946_p2 }
  0x3f   :  { %205 = vmatprep.subr.bf16.mxu0 %v818_v19  ;;  %419 = vmatprep.subr.bf16.mxu1 %v842_v39  ;;  %v249_v19 = vmul.f32 %v247_v6, %v1011_v9 }
  0x40   :  { %p949_p5 = pnand %p948_p4, %p942_p1 }
  0x42   :  { %206 = vmatpush1.bf16.msra.mxu0 %v820_v23  ;;  %420 = vmatpush1.bf16.msra.mxu1 %v844_v40 }
  0x43   :  { %207 = vmatprep.subr.bf16.mxu0 %v821_v24  ;;  %421 = vmatprep.subr.bf16.mxu1 %v845_v41  ;;  %v866_v41 = vld [vmem:[#allocation5 + $0x150] ss:$8 sps:$4 sm:$0xff]  }
  0x46   :  { %208 = vmatpush1.bf16.msra.mxu0 %v823_v29  ;;  %422 = vmatpush1.bf16.msra.mxu1 %v847_v42  ;;  %v271_v29 = vrot.slane %v61_v60, %v1039_v18  ;;  %v871_v42 = vld [vmem:[#allocation5 + $0x144] ss:$8 sps:$4 sm:$0xff]  }
  0x47   :  { %223 = vmatprep.subr.bf16.mxu0 %v191_v32  ;;  %423 = vmatprep.subr.bf16.mxu1 %v848_v43  ;;  %v869_v43 = vld [vmem:[#allocation5 + $0x140] ss:$8 sps:$4 sm:$0xff]  }
  0x4a   :  { %224 = vmatpush2.bf16.msra.mxu0 %v188_v33  ;;  %424 = vmatpush1.bf16.msra.mxu1 %v850_v44  ;;  %v874_v44 = vld [vmem:[#allocation5 + $0x134] ss:$8 sps:$4 sm:$0xff]  }
  0x4b   :  { %439 = vmatprep.subr.bf16.mxu1 %v407_v47  ;;  %625 = vmatprep.subr.bf16.mxu0 %v856_v50  ;;  %v875_v47 = vld [vmem:[#allocation5 + $0x120] ss:$8 sps:$4 sm:$0xff]  }
  0x4d   :  { %226 = vmatmul.mubr.bf16.vlgmr.msra.gmra.mxu0 %v63_v36 }
  0x4e   :  { %440 = vmatpush2.bf16.msra.mxu1 %v404_v48  ;;  %626 = vmatpush1.bf16.msra.mxu0 %v854_v49  ;;  %v880_v48 = vld [vmem:[#allocation5 + $0x1a4] ss:$8 sps:$4 sm:$0xff]   ;;  %v878_v49 = vld [vmem:[#allocation5 + $0x1a0] ss:$8 sps:$4 sm:$0xff]  }
  0x4f   :  { %627 = vmatprep.subr.bf16.mxu0 %v859_v51  ;;  %v623_v50 = vand.u32 %v880_v48, %v1018_v30  ;;  %v620_v51 = vand.u32 %v878_v49, %v1018_v30 }
  0x52   :  { %628 = vmatpush1.bf16.msra.mxu0 %v857_v52  ;;  %v281_v52 = vld [vmem:[#allocation7 + $0x10] sm:$0xff] }
  0x53   :  { %629 = vmatprep.subr.bf16.mxu0 %v862_v53  ;;  %v307_v53 = vrot.slane %v281_v52, %v1027_v59  ;;  %v471_v58 = vrot.slane %v281_v52, %v1032_v0 }
  0x56   :  { %630 = vmatpush1.bf16.msra.mxu0 %v860_v54  ;;  %v282_v54 = vld [vmem:[#allocation7 + $0x18] sm:$0xff] }
  0x57   :  { %631 = vmatprep.subr.bf16.mxu0 %v865_v55  ;;  %v311_v55 = vrot.slane %v282_v54, %v1027_v59  ;;  %v475_v2 = vrot.slane %v282_v54, %v1032_v0  ;;  %v463_v30 = vrot.slane %v282_v54, %v1029_v62 }
  0x5a   :  { %632 = vmatpush1.bf16.msra.mxu0 %v863_v56 }
  0x5b   :  { %633 = vmatprep.subr.bf16.mxu0 %v868_v10 }
  0x5e   :  { %634 = vmatpush1.bf16.msra.mxu0 %v866_v41 }
  0x5f   :  { %635 = vmatprep.subr.bf16.mxu0 %v871_v42 }
  0x62   :  { %636 = vmatpush1.bf16.msra.mxu0 %v869_v43 }
  0x63   :  { %637 = vmatprep.subr.bf16.mxu0 %v874_v44 }
  0x66   :  { %638 = vmatpush1.bf16.msra.mxu0 %v872_v45 }
  0x67   :  { %639 = vmatprep.subr.bf16.mxu0 %v877_v46 }
  0x6a   :  { %640 = vmatpush1.bf16.msra.mxu0 %v875_v47 }
  0x6b   :  { %655 = vmatprep.subr.bf16.mxu0 %v623_v50 }
  0x6e   :  { %656 = vmatpush2.bf16.msra.mxu0 %v620_v51 }
 0x10d   :  { %v227_v3 = vpop.f32.mrf.mxu0 }
 0x10e   :  { %v228_v4 = vadd.f32 %v227_v3, %v86_v63 }
 0x10f   :  { %v229_v7 = vpop.f32.mrf.mxu0 }
 0x110   :  { %v236_v8 = vmax.f32 %v228_v4, 0.0  ;;  %v230_v11 = vadd.f32 %v229_v7, %v90_v1 }
 0x111   :  { %v231_v14 = vpop.f32.mrf.mxu0 }
 0x112   :  { %v260_v15 = vmul.f32 %v255_v5, %v236_v8  ;;  %v237_v16 = vmax.f32 %v230_v11, 0.0  ;;  %v232_v17 = vadd.f32 %v231_v14, %v86_v63  ;;  %v459_v63 = vrot.slane %v281_v52, %v1029_v62 }
 0x113   :  { %v233_v20 = vpop.f32.mrf.mxu0 }
 0x114   :  { %v261_v22 = vmul.f32 %v259_v12, %v237_v16  ;;  %v238_v23 = vmax.f32 %v232_v17, 0.0  ;;  %v234_v24 = vadd.f32 %v233_v20, %v90_v1  ;;  %v264_v26 = vadd.f32 %v260_v15, %v248_v13 }
 0x115   :  { %v487_v17 = vrot.slane %v281_v52, %v1039_v18 }
 0x116   :  { %v262_v27 = vmul.f32 %v255_v5, %v238_v23  ;;  %v239_v28 = vmax.f32 %v234_v24, 0.0  ;;  %v265_v31 = vadd.f32 %v261_v22, %v249_v19  ;;  %v276_v9 = vadd.f32 %v271_v29, %v264_v26 }
 0x117   :  { %v491_v23 = vrot.slane %v282_v54, %v1039_v18 }
 0x118   :  { %v266_v32 = vadd.f32 %v262_v27, %v250_v21  ;;  %v263_v33 = vmul.f32 %v259_v12, %v239_v28  ;;  %v277_v38 = vadd.f32 %v275_v34, %v265_v31  ;;  %v464_v8 = vmul.f32 %v459_v63, %v276_v9 }
 0x11a   :  { %v267_v36 = vadd.f32 %v263_v33, %v251_v25  ;;  %v278_v37 = vadd.f32 %v271_v29, %v266_v32  ;;  %v465_v14 = vmul.f32 %v463_v30, %v277_v38 }
 0x11c   :  { %v279_v35 = vadd.f32 %v275_v34, %v267_v36  ;;  %v283_v39 = vpack.c.bf16 %v278_v37, %v276_v9  ;;  %v466_v15 = vmul.f32 %v459_v63, %v278_v37  ;;  %v497_v34 = vld [vmem:[#allocation7 + $0x20] sm:$0xff]  ;;  %v498_v9 = vld [vmem:[#allocation7 + $0x28] sm:$0xff] }
 0x11d   :  { %v523_v36 = vrot.slane %v497_v34, %v1027_v59  ;;  %v527_v37 = vrot.slane %v498_v9, %v1027_v59  ;;  %v679_v41 = vrot.slane %v498_v9, %v1029_v62  ;;  %v691_v44 = vrot.slane %v498_v9, %v1032_v0 }
 0x11e   :  { %v284_v40 = vpack.c.bf16 %v279_v35, %v277_v38  ;;  %v467_v21 = vmul.f32 %v463_v30, %v279_v35  ;;  %v675_v35 = vrot.slane %v497_v34, %v1029_v62  ;;  %v703_v48 = vrot.slane %v497_v34, %v1039_v18 }
 0x11f   :  { %v707_v51 = vrot.slane %v498_v9, %v1039_v18 }
 0x120   :  { %771 = vmatprep.mubr.msk.bf16.mxu1 %vm179_vm0, %v284_v40  ;;  %v687_v40 = vrot.slane %v497_v34, %v1032_v0 }
 0x121   :  { %442 = vmatmul.mubr.bf16.vlgmr.msra.gmra.mxu1 %v283_v39 }
 0x1e1   :  { %v443_v56 = vpop.f32.mrf.mxu1 }
 0x1e2   :  { %v444_v57 = vadd.f32 %v443_v56, %v307_v53 }
 0x1e3   :  { %v445_v60 = vpop.f32.mrf.mxu1 }
 0x1e4   :  { %v452_v61 = vmax.f32 %v444_v57, 0.0  ;;  %v446_v1 = vadd.f32 %v445_v60, %v311_v55 }
 0x1e5   :  { %v447_v3 = vpop.f32.mrf.mxu1 }
 0x1e6   :  { %v476_v4 = vmul.f32 %v471_v58, %v452_v61  ;;  %v453_v5 = vmax.f32 %v446_v1, 0.0  ;;  %v448_v6 = vadd.f32 %v447_v3, %v307_v53 }
 0x1e7   :  { %v449_v7 = vpop.f32.mrf.mxu1 }
 0x1e8   :  { %v477_v11 = vmul.f32 %v475_v2, %v453_v5  ;;  %v454_v12 = vmax.f32 %v448_v6, 0.0  ;;  %v450_v13 = vadd.f32 %v449_v7, %v311_v55  ;;  %v480_v16 = vadd.f32 %v476_v4, %v464_v8 }
 0x1ea   :  { %v478_v19 = vmul.f32 %v471_v58, %v454_v12  ;;  %v455_v20 = vmax.f32 %v450_v13, 0.0  ;;  %v481_v22 = vadd.f32 %v477_v11, %v465_v14  ;;  %v492_v26 = vadd.f32 %v487_v17, %v480_v16 }
 0x1ec   :  { %v482_v24 = vadd.f32 %v478_v19, %v466_v15  ;;  %v479_v25 = vmul.f32 %v475_v2, %v455_v20  ;;  %v493_v29 = vadd.f32 %v491_v23, %v481_v22  ;;  %v680_v45 = vmul.f32 %v675_v35, %v492_v26 }
 0x1ee   :  { %v494_v27 = vadd.f32 %v487_v17, %v482_v24  ;;  %v483_v28 = vadd.f32 %v479_v25, %v467_v21  ;;  %v681_v50 = vmul.f32 %v679_v41, %v493_v29 }
 0x1f0   :  { %v495_v31 = vadd.f32 %v491_v23, %v483_v28  ;;  %v499_v32 = vpack.c.bf16 %v494_v27, %v492_v26  ;;  %v682_v62 = vmul.f32 %v675_v35, %v494_v27 }
 0x1f2   :  { %v500_v33 = vpack.c.bf16 %v495_v31, %v493_v29  ;;  %v683_v1 = vmul.f32 %v679_v41, %v495_v31 }
 0x1f4   :  { %790 = vmatprep.mubr.msk.bf16.mxu0 %vm179_vm0, %v500_v33 }
 0x1f5   :  { %658 = vmatmul.mubr.bf16.vlgmr.msra.gmra.mxu0 %v499_v32 }
 0x2b5   :  { %v659_v38 = vpop.f32.mrf.mxu0 }
 0x2b6   :  { %v660_v39 = vadd.f32 %v659_v38, %v523_v36 }
 0x2b7   :  { %v661_v10 = vpop.f32.mrf.mxu0 }
 0x2b8   :  { %v668_v42 = vmax.f32 %v660_v39, 0.0  ;;  %v662_v43 = vadd.f32 %v661_v10, %v527_v37 }
 0x2b9   :  { %v663_v46 = vpop.f32.mrf.mxu0 }
 0x2ba   :  { %v692_v47 = vmul.f32 %v687_v40, %v668_v42  ;;  %v669_v49 = vmax.f32 %v662_v43, 0.0  ;;  %v664_v59 = vadd.f32 %v663_v46, %v523_v36 }
 0x2bb   :  { %v665_v52 = vpop.f32.mrf.mxu0 }
 0x2bc   :  { %v696_v53 = vadd.f32 %v692_v47, %v680_v45  ;;  %v693_v54 = vmul.f32 %v691_v44, %v669_v49  ;;  %v670_v55 = vmax.f32 %v664_v59, 0.0  ;;  %v666_v56 = vadd.f32 %v665_v52, %v527_v37 }
 0x2be   :  { %v708_v57 = vadd.f32 %v703_v48, %v696_v53  ;;  %v697_v58 = vadd.f32 %v693_v54, %v681_v50  ;;  %v694_v60 = vmul.f32 %v687_v40, %v670_v55  ;;  %v671_v0 = vmax.f32 %v666_v56, 0.0 }
 0x2c0   :  { %712 = vst [vmem:[#allocation8] sm:$0xff] %v708_v57  ;;  %v709_v61 = vadd.f32 %v707_v51, %v697_v58  ;;  %v698_v63 = vadd.f32 %v694_v60, %v682_v62  ;;  %v695_v2 = vmul.f32 %v691_v44, %v671_v0 }
 0x2c2   :  { %713 = vst.msk [vmem:[#allocation8 + $0x8] sm:$0xff] %vm179_vm0, %v709_v61  ;;  %v710_v18 = vadd.f32 %v703_v48, %v698_v63  ;;  %v699_v30 = vadd.f32 %v695_v2, %v683_v1 }
 0x2c4   :  { %714 = vst [vmem:[#allocation8 + $0x10] sm:$0xff] %v710_v18  ;;  %v711_v3 = vadd.f32 %v707_v51, %v699_v30 }
 0x2c6   :  { %715 = vst.msk [vmem:[#allocation8 + $0x18] sm:$0xff] %vm179_vm0, %v711_v3 }
 0x2c7   :  { %952 = shalt.err (!%p949_p5)
}
 0x2c8   :  { %727 = dma.vmem_to_hbm [thread:$0]  %s722_s2, 512, %s1077_s3, [#allocation4], %s971_s22, %s971_s22, %s972_s23  }
 0x2c9   :  { %965 = dma.done.wait [#allocation4], 512  }
 0x2ca   :  { %966 = vsyncadd [#allocation4], 4294966784 }
 0x2cb   :  { %731 = vsyncpa [#allocation3], 1 }
 0x2cc   :  { %732 = vsyncpa [#allocation6], 1 }
 0x2cd   :  { %733 = vsyncpa [#allocation4], 1 }

</bundles_post_ra>
